<compile_context>
chip_gen: v7x
topology: tpu7x:2x2x1
jax: 0.10.0
libtpu: 0.0.40
codegen_flags: <defaults>
</compile_context>

<pallas_src>
import jax
import jax.numpy as jnp
from jax import lax
from jax.experimental import pallas as pl
from jax.experimental.pallas import tpu as pltpu


def _round_up(n, m):
    return -(-n // m) * m


# ---------------------------------------------------------------------------
# Pallas kernel: one grid step = one time chunk (for one batch shard).
#   h0_ref   : (Bs, H)         initial hidden state (f32)
#   gi_ref   : (Lc, 3, Bs, H)  input projection chunk, biases folded (f32)
#   whh_ref  : (3, H, H)       W_hh^T per gate (matmul dtype)
#   bhhn_ref : (1, H)          n-gate hidden bias (f32)
#   out_ref  : (Lc, Bs, H)     per-timestep hidden states (f32)
#   h_scr    : (Bs, H)         persistent hidden-state carry (f32, scratch)
# ---------------------------------------------------------------------------
def gru_chunk_kernel(h0_ref, gi_ref, whh_ref, bhhn_ref, out_ref, h_scr):
    Lc, Bs, H = out_ref.shape

    # (Re)initialize the carried hidden state at the first chunk of this shard.
    @pl.when(pl.program_id(1) == 0)
    def _():
        h_scr[...] = h0_ref[...].astype(jnp.float32)

    whh = whh_ref[...]                      # (3, H, H), matmul dtype
    mm_dtype = whh.dtype
    whh_r, whh_z, whh_n = whh[0], whh[1], whh[2]   # leading-axis split (free)
    bhh_n = jnp.broadcast_to(bhhn_ref[...], (Bs, H))   # hoisted out of the loop

    def step(t, h):
        g = gi_ref[t]                       # (3, Bs, H), dynamic leading index
        gi_r, gi_z, gi_n = g[0], g[1], g[2]
        h_mm = h.astype(mm_dtype)
        gh_r = jnp.dot(h_mm, whh_r, preferred_element_type=jnp.float32)
        gh_z = jnp.dot(h_mm, whh_z, preferred_element_type=jnp.float32)
        gh_n = jnp.dot(h_mm, whh_n, preferred_element_type=jnp.float32) + bhh_n

        r = jax.nn.sigmoid(gi_r + gh_r)     # b_ih, b_hh[r] folded into gi_r
        z = jax.nn.sigmoid(gi_z + gh_z)     # b_ih, b_hh[z] folded into gi_z
        n = jnp.tanh(gi_n + r * gh_n)
        h_new = (1.0 - z) * n + z * h

        out_ref[t] = h_new.astype(out_ref.dtype)
        return h_new

    unroll = max(1, min(8, Lc))             # bounded unroll: LLO visibility, no spill cliff
    h_final = lax.fori_loop(0, Lc, step, h_scr[...], unroll=unroll)
    h_scr[...] = h_final                    # carry to the next chunk


# ---------------------------------------------------------------------------
# Core recurrence wrapper: pads, tiles the time axis over a grid, streams gi.
# ---------------------------------------------------------------------------
def gru_recurrence_pallas(gi, h0, whh_t, bhh_n, *, time_chunk=None, batch_shards=1):
    """gi: (L, 3, B, H) f32 (input projection, b_ih + b_hh[r,z] folded in),
    h0: (B, H) f32, whh_t: (3, H, H) in matmul dtype, bhh_n: (1, H) f32.
    Returns out: (L, B, H) f32."""
    L, three, B, H = gi.shape
    assert three == 3
    mm_dtype = whh_t.dtype

    # Sublane packing for the per-step MXU LHS (h): 16 rows for bf16, 8 for f32.
    sub = 16 if mm_dtype == jnp.bfloat16 else 8
    unit = sub * batch_shards
    Bp = _round_up(max(B, 1), unit)
    Bs = Bp // batch_shards

    Lc = time_chunk if time_chunk is not None else min(L, 16)
    Lc = max(1, min(Lc, L))
    Lp = _round_up(L, Lc)

    # Pad time (zeros -> harmless extra steps, sliced off) and batch.
    if (Lp, Bp) != (L, B):
        gi = jnp.pad(gi, ((0, Lp - L), (0, 0), (0, Bp - B), (0, 0)))
        h0 = jnp.pad(h0, ((0, Bp - B), (0, 0)))

    # Explicit VMEM budget (double-buffered gi/out chunks + resident weights),
    # capped at v7x's 64 MiB physical; if this caps, shrink time_chunk.
    lane_H = _round_up(H, 128)
    sub_Bs = _round_up(Bs, 16)
    gi_blk = Lc * 3 * sub_Bs * lane_H * 4
    out_blk = Lc * sub_Bs * lane_H * 4
    resident = (3 * _round_up(H, 16) * lane_H * jnp.dtype(mm_dtype).itemsize
                + 2 * sub_Bs * lane_H * 4 + 16 * 128 * 4)
    est = 2 * (gi_blk + out_blk) + 2 * resident
    vmem_limit = int(min(64 * 1024 * 1024, max(8 * 1024 * 1024, 2 * est)))

    grid = (batch_shards, Lp // Lc)

    out_p = pl.pallas_call(
        gru_chunk_kernel,
        out_shape=jax.ShapeDtypeStruct((Lp, Bp, H), jnp.float32),
        grid_spec=pltpu.PrefetchScalarGridSpec(
            num_scalar_prefetch=0,
            grid=grid,
            in_specs=[
                pl.BlockSpec((Bs, H), lambda b, c: (b, 0)),              # h0
                pl.BlockSpec((Lc, 3, Bs, H), lambda b, c: (c, 0, b, 0)),  # gi (streamed)
                pl.BlockSpec((3, H, H), lambda b, c: (0, 0, 0)),          # W_hh^T (resident)
                pl.BlockSpec((1, H), lambda b, c: (0, 0)),                # b_hh[n]
            ],
            out_specs=pl.BlockSpec((Lc, Bs, H), lambda b, c: (c, b, 0)),  # streamed writeback
            scratch_shapes=[pltpu.VMEM((Bs, H), jnp.float32)],            # persistent h carry
        ),
        compiler_params=pltpu.CompilerParams(
            dimension_semantics=("parallel", "arbitrary"),
            vmem_limit_bytes=vmem_limit,
        ),
    )(h0, gi, whh_t, bhh_n)

    return out_p[:L, :B, :]


# ---------------------------------------------------------------------------
# GruEncoder.forward: embedding lookup -> view(L, B, E) -> nn.GRU.
# ---------------------------------------------------------------------------
def gru_encoder_forward(word_idxs, hidden_state, params, cfg,
                        matmul_dtype=jnp.float32, time_chunk=None, batch_shards=1):
    L, B, E = cfg["review_len"], cfg["batch_size"], cfg["embed_size"]
    H = cfg["context_size"]
    emb = params["embedding"]
    w_ih, w_hh = params["w_ih"], params["w_hh"]
    b_ih, b_hh = params["b_ih"], params["b_hh"]
    V = emb.shape[0]

    # Fold b_ih (all gates) + b_hh (r, z gates only) into the input projection.
    bias = b_ih + jnp.concatenate([b_hh[:2 * H], jnp.zeros((H,), b_hh.dtype)])

    idx = word_idxs.reshape(-1)
    if V <= L * B:
        # Small vocab: premultiply the embedding table by W_ih^T once and gather
        # gi rows directly -- skips both the (L*B, E) embedding gather and the
        # (L*B, E) @ (E, 3H) projection matmul.
        gi_table = emb @ w_ih.T + bias                       # (V, 3H)
        gi2d = jnp.take(gi_table, idx, axis=0)               # (L*B, 3H)
    else:
        embedded = jnp.take(emb, idx, axis=0)                # (L*B, E)
        gi2d = embedded @ w_ih.T + bias                      # (L*B, 3H)

    # Leading gate axis: (L, 3, B, H). Wrapper-side layout plumbing (free).
    gi = gi2d.reshape(L, B, 3, H).transpose(0, 2, 1, 3).astype(jnp.float32)

    # Per-gate hidden weights, transposed: whh_t[g] = W_hg^T, shape (H, H).
    whh_t = jnp.transpose(w_hh.reshape(3, H, H), (0, 2, 1)).astype(matmul_dtype)
    bhh_n = b_hh[2 * H:].reshape(1, H).astype(jnp.float32)

    h0 = hidden_state[0]                                     # n_layers == 1
    out = gru_recurrence_pallas(gi, h0, whh_t, bhh_n,
                                time_chunk=time_chunk, batch_shards=batch_shards)
    return out, out[-1][None, :, :]                          # (L,B,H), (1,B,H)


# ---------------------------------------------------------------------------
# Pure-JAX reference (lax.scan) for the correctness check.
# ---------------------------------------------------------------------------
def gru_reference(x, h0, w_ih, w_hh, b_ih, b_hh):
    H = h0.shape[-1]

    def step(h_prev, x_t):
        gi = x_t @ w_ih.T + b_ih
        gh = h_prev @ w_hh.T + b_hh
        r = jax.nn.sigmoid(gi[:, :H] + gh[:, :H])
        z = jax.nn.sigmoid(gi[:, H:2 * H] + gh[:, H:2 * H])
        n = jnp.tanh(gi[:, 2 * H:] + r * gh[:, 2 * H:])
        h_new = (1.0 - z) * n + z * h_prev
        return h_new, h_new

    h_n, out = lax.scan(step, h0, x)
    return out, h_n


if __name__ == "__main__":
    cfg = dict(review_len=8, batch_size=4, embed_size=32, context_size=32, vocab_size=16)
    L, B, E, H, V = (cfg["review_len"], cfg["batch_size"], cfg["embed_size"],
                     cfg["context_size"], cfg["vocab_size"])

    key = jax.random.PRNGKey(0)
    k_emb, k_wih, k_whh, k_bih, k_bhh, k_idx, k_h0 = jax.random.split(key, 7)
    params = {
        "embedding": jax.random.normal(k_emb, (V, E), jnp.float32) * 0.1,
        "w_ih": jax.random.normal(k_wih, (3 * H, E), jnp.float32) * 0.1,
        "w_hh": jax.random.normal(k_whh, (3 * H, H), jnp.float32) * 0.1,
        "b_ih": jax.random.normal(k_bih, (3 * H,), jnp.float32) * 0.1,
        "b_hh": jax.random.normal(k_bhh, (3 * H,), jnp.float32) * 0.1,
    }

    word_idxs = jax.random.randint(k_idx, (L, B), 0, V, jnp.int32)
    hidden_state = jax.random.normal(k_h0, (1, B, H), jnp.float32)   # init_hidden()

    # Reference.
    embedded = jnp.take(params["embedding"], word_idxs.reshape(-1), axis=0).reshape(L, B, E)
    ref_out, ref_hn = gru_reference(embedded, hidden_state[0],
                                    params["w_ih"], params["w_hh"],
                                    params["b_ih"], params["b_hh"])

    # f32 path: two time chunks of 4 (exercises the persistent-h carry), tight check.
    out, h_n = gru_encoder_forward(word_idxs, hidden_state, params, cfg, time_chunk=4)
    out = jax.block_until_ready(out)
    h_n = jax.block_until_ready(h_n)
    assert out.shape == (L, B, H) and h_n.shape == (1, B, H)
    assert jnp.allclose(out, ref_out, atol=1e-5, rtol=1e-5)
    assert jnp.allclose(h_n[0], ref_hn, atol=1e-5, rtol=1e-5)

    # bf16-operand path (v5e/v6e/v7x MXU native dtype, f32 accumulation):
    # time_chunk=3 exercises time padding (L=8 -> 9), batch pads to 16 sublanes.
    out_bf, h_bf = gru_encoder_forward(word_idxs, hidden_state, params, cfg,
                                       matmul_dtype=jnp.bfloat16, time_chunk=3)
    out_bf = jax.block_until_ready(out_bf)
    assert jnp.allclose(out_bf, ref_out, atol=3e-2, rtol=3e-2)
    assert jnp.allclose(h_bf[0], ref_hn, atol=3e-2, rtol=3e-2)

    print("KERNEL_OK")
</pallas_src>

<mosaic_0001>
module attributes {stable_mosaic.version = 11 : i64} {
  func.func @gru_chunk_kernel(%arg0: i32, %arg1: i32, %arg2: memref<8x32xf32, #tpu.memory_space<vmem>>, %arg3: memref<4x3x8x32xf32, #tpu.memory_space<vmem>>, %arg4: memref<3x32x32xf32, #tpu.memory_space<vmem>>, %arg5: memref<1x32xf32, #tpu.memory_space<vmem>>, %arg6: memref<4x8x32xf32, #tpu.memory_space<vmem>>, %arg7: memref<8x32xf32, #tpu.memory_space<vmem>>) attributes {dimension_semantics = [#tpu.dimension_semantics<parallel>, #tpu.dimension_semantics<arbitrary>], iteration_bounds = array<i64: 1, 2>, scalar_prefetch = 0 : i64, scratch_operands = 1 : i64, tpu.core_type = #tpu.core_type<tc>, window_params = [{transform_indices = @transform_0, window_bounds = array<i64: 8, 32>}, {transform_indices = @transform_1, window_bounds = array<i64: 4, 3, 8, 32>}, {pipeline_mode = #tpu.pipeline_mode<synchronous>, transform_indices = @transform_2, window_bounds = array<i64: 3, 32, 32>}, {pipeline_mode = #tpu.pipeline_mode<synchronous>, transform_indices = @transform_3, window_bounds = array<i64: 1, 32>}, {transform_indices = @transform_4, window_bounds = array<i64: 4, 8, 32>}]} {
    %c0_i32 = arith.constant 0 : i32
    %0 = arith.cmpi eq, %arg1, %c0_i32 : i32
    %1 = arith.extui %0 : i1 to i32
    %c0_i32_0 = arith.constant 0 : i32
    %2 = arith.cmpi ne, %1, %c0_i32_0 : i32
    scf.if %2 {
      %c0_53 = arith.constant 0 : index
      %c0_54 = arith.constant 0 : index
      %163 = vector.load %arg2[%c0_53, %c0_54] : memref<8x32xf32, #tpu.memory_space<vmem>>, vector<8x32xf32>
      %c0_55 = arith.constant 0 : index
      %c0_56 = arith.constant 0 : index
      %164 = vector.load %arg7[%c0_55, %c0_56] : memref<8x32xf32, #tpu.memory_space<vmem>>, vector<8x32xf32>
      tpu.vector_store %arg7[%c0_55, %c0_56], %163 {strides = array<i32>} : memref<8x32xf32, #tpu.memory_space<vmem>>, vector<8x32xf32>,
    } else {
    }
    %c0 = arith.constant 0 : index
    %c0_1 = arith.constant 0 : index
    %c0_2 = arith.constant 0 : index
    %3 = vector.load %arg4[%c0, %c0_1, %c0_2] : memref<3x32x32xf32, #tpu.memory_space<vmem>>, vector<3x32x32xf32>
    %4 = vector.extract_strided_slice %3 {offsets = [0, 0, 0], sizes = [1, 32, 32], strides = [1, 1, 1]} : vector<3x32x32xf32> to vector<1x32x32xf32>
    %5 = vector.shape_cast %4 : vector<1x32x32xf32> to vector<32x32xf32>
    %6 = vector.extract_strided_slice %3 {offsets = [1, 0, 0], sizes = [1, 32, 32], strides = [1, 1, 1]} : vector<3x32x32xf32> to vector<1x32x32xf32>
    %7 = vector.shape_cast %6 : vector<1x32x32xf32> to vector<32x32xf32>
    %8 = vector.extract_strided_slice %3 {offsets = [2, 0, 0], sizes = [1, 32, 32], strides = [1, 1, 1]} : vector<3x32x32xf32> to vector<1x32x32xf32>
    %9 = vector.shape_cast %8 : vector<1x32x32xf32> to vector<32x32xf32>
    %c0_3 = arith.constant 0 : index
    %c0_4 = arith.constant 0 : index
    %10 = vector.load %arg5[%c0_3, %c0_4] : memref<1x32xf32, #tpu.memory_space<vmem>>, vector<1x32xf32>
    %11 = vector.shape_cast %10 : vector<1x32xf32> to vector<1x32xf32>
    %12 = vector.broadcast %11 : vector<1x32xf32> to vector<8x32xf32>
    %c0_5 = arith.constant 0 : index
    %c0_6 = arith.constant 0 : index
    %13 = vector.load %arg7[%c0_5, %c0_6] : memref<8x32xf32, #tpu.memory_space<vmem>>, vector<8x32xf32>
    %c0_i32_7 = arith.constant 0 : i32
    %14 = arith.index_cast %c0_i32_7 : i32 to index
    %c0_8 = arith.constant 0 : index
    %c0_9 = arith.constant 0 : index
    %c0_10 = arith.constant 0 : index
    %15 = vector.load %arg3[%14, %c0_8, %c0_9, %c0_10] : memref<4x3x8x32xf32, #tpu.memory_space<vmem>>, vector<1x3x8x32xf32>
    %16 = vector.shape_cast %15 : vector<1x3x8x32xf32> to vector<3x8x32xf32>
    %17 = vector.extract_strided_slice %16 {offsets = [0, 0, 0], sizes = [1, 8, 32], strides = [1, 1, 1]} : vector<3x8x32xf32> to vector<1x8x32xf32>
    %18 = vector.shape_cast %17 : vector<1x8x32xf32> to vector<8x32xf32>
    %19 = vector.extract_strided_slice %16 {offsets = [1, 0, 0], sizes = [1, 8, 32], strides = [1, 1, 1]} : vector<3x8x32xf32> to vector<1x8x32xf32>
    %20 = vector.shape_cast %19 : vector<1x8x32xf32> to vector<8x32xf32>
    %21 = vector.extract_strided_slice %16 {offsets = [2, 0, 0], sizes = [1, 8, 32], strides = [1, 1, 1]} : vector<3x8x32xf32> to vector<1x8x32xf32>
    %22 = vector.shape_cast %21 : vector<1x8x32xf32> to vector<8x32xf32>
    %cst = arith.constant dense<0.000000e+00> : vector<8x32xf32>
    %23 = tpu.matmul %13, %5, %cst {dimension_numbers = #tpu.dot_dimension_numbers<[1], [0], [0], [1], [0, 0, 1, 1], [], []>} : vector<8x32xf32>, vector<32x32xf32>, vector<8x32xf32> -> vector<8x32xf32>
    %cst_11 = arith.constant dense<0.000000e+00> : vector<8x32xf32>
    %24 = tpu.matmul %13, %7, %cst_11 {dimension_numbers = #tpu.dot_dimension_numbers<[1], [0], [0], [1], [0, 0, 1, 1], [], []>} : vector<8x32xf32>, vector<32x32xf32>, vector<8x32xf32> -> vector<8x32xf32>
    %cst_12 = arith.constant dense<0.000000e+00> : vector<8x32xf32>
    %25 = tpu.matmul %13, %9, %cst_12 {dimension_numbers = #tpu.dot_dimension_numbers<[1], [0], [0], [1], [0, 0, 1, 1], [], []>} : vector<8x32xf32>, vector<32x32xf32>, vector<8x32xf32> -> vector<8x32xf32>
    %26 = arith.addf %25, %12 : vector<8x32xf32>
    %27 = arith.addf %18, %23 : vector<8x32xf32>
    %28 = arith.negf %27 : vector<8x32xf32>
    %29 = math.exp %28 : vector<8x32xf32>
    %cst_13 = arith.constant 1.000000e+00 : f32
    %30 = vector.broadcast %cst_13 : f32 to vector<8x32xf32>
    %31 = arith.addf %30, %29 : vector<8x32xf32>
    %32 = arith.divf %30, %31 : vector<8x32xf32>
    %33 = arith.addf %20, %24 : vector<8x32xf32>
    %34 = arith.negf %33 : vector<8x32xf32>
    %35 = math.exp %34 : vector<8x32xf32>
    %cst_14 = arith.constant 1.000000e+00 : f32
    %36 = vector.broadcast %cst_14 : f32 to vector<8x32xf32>
    %37 = arith.addf %36, %35 : vector<8x32xf32>
    %38 = arith.divf %36, %37 : vector<8x32xf32>
    %39 = arith.mulf %32, %26 : vector<8x32xf32>
    %40 = arith.addf %22, %39 : vector<8x32xf32>
    %41 = math.tanh %40 : vector<8x32xf32>
    %cst_15 = arith.constant 1.000000e+00 : f32
    %42 = vector.broadcast %cst_15 : f32 to vector<8x32xf32>
    %43 = arith.subf %42, %38 : vector<8x32xf32>
    %44 = arith.mulf %43, %41 : vector<8x32xf32>
    %45 = arith.mulf %38, %13 : vector<8x32xf32>
    %46 = arith.addf %44, %45 : vector<8x32xf32>
    %47 = arith.index_cast %c0_i32_7 : i32 to index
    %c0_16 = arith.constant 0 : index
    %c0_17 = arith.constant 0 : index
    %48 = vector.load %arg6[%47, %c0_16, %c0_17] : memref<4x8x32xf32, #tpu.memory_space<vmem>>, vector<1x8x32xf32>
    %49 = vector.shape_cast %48 : vector<1x8x32xf32> to vector<8x32xf32>
    %50 = vector.shape_cast %46 : vector<8x32xf32> to vector<1x8x32xf32>
    tpu.vector_store %arg6[%47, %c0_16, %c0_17], %50 {strides = array<i32>} : memref<4x8x32xf32, #tpu.memory_space<vmem>>, vector<1x8x32xf32>,
    %c1_i32 = arith.constant 1 : i32
    %51 = arith.index_cast %c1_i32 : i32 to index
    %c0_18 = arith.constant 0 : index
    %c0_19 = arith.constant 0 : index
    %c0_20 = arith.constant 0 : index
    %52 = vector.load %arg3[%51, %c0_18, %c0_19, %c0_20] : memref<4x3x8x32xf32, #tpu.memory_space<vmem>>, vector<1x3x8x32xf32>
    %53 = vector.shape_cast %52 : vector<1x3x8x32xf32> to vector<3x8x32xf32>
    %54 = vector.extract_strided_slice %53 {offsets = [0, 0, 0], sizes = [1, 8, 32], strides = [1, 1, 1]} : vector<3x8x32xf32> to vector<1x8x32xf32>
    %55 = vector.shape_cast %54 : vector<1x8x32xf32> to vector<8x32xf32>
    %56 = vector.extract_strided_slice %53 {offsets = [1, 0, 0], sizes = [1, 8, 32], strides = [1, 1, 1]} : vector<3x8x32xf32> to vector<1x8x32xf32>
    %57 = vector.shape_cast %56 : vector<1x8x32xf32> to vector<8x32xf32>
    %58 = vector.extract_strided_slice %53 {offsets = [2, 0, 0], sizes = [1, 8, 32], strides = [1, 1, 1]} : vector<3x8x32xf32> to vector<1x8x32xf32>
    %59 = vector.shape_cast %58 : vector<1x8x32xf32> to vector<8x32xf32>
    %cst_21 = arith.constant dense<0.000000e+00> : vector<8x32xf32>
    %60 = tpu.matmul %46, %5, %cst_21 {dimension_numbers = #tpu.dot_dimension_numbers<[1], [0], [0], [1], [0, 0, 1, 1], [], []>} : vector<8x32xf32>, vector<32x32xf32>, vector<8x32xf32> -> vector<8x32xf32>
    %cst_22 = arith.constant dense<0.000000e+00> : vector<8x32xf32>
    %61 = tpu.matmul %46, %7, %cst_22 {dimension_numbers = #tpu.dot_dimension_numbers<[1], [0], [0], [1], [0, 0, 1, 1], [], []>} : vector<8x32xf32>, vector<32x32xf32>, vector<8x32xf32> -> vector<8x32xf32>
    %cst_23 = arith.constant dense<0.000000e+00> : vector<8x32xf32>
    %62 = tpu.matmul %46, %9, %cst_23 {dimension_numbers = #tpu.dot_dimension_numbers<[1], [0], [0], [1], [0, 0, 1, 1], [], []>} : vector<8x32xf32>, vector<32x32xf32>, vector<8x32xf32> -> vector<8x32xf32>
    %63 = arith.addf %62, %12 : vector<8x32xf32>
    %64 = arith.addf %55, %60 : vector<8x32xf32>
    %65 = arith.negf %64 : vector<8x32xf32>
    %66 = math.exp %65 : vector<8x32xf32>
    %cst_24 = arith.constant 1.000000e+00 : f32
    %67 = vector.broadcast %cst_24 : f32 to vector<8x32xf32>
    %68 = arith.addf %67, %66 : vector<8x32xf32>
    %69 = arith.divf %67, %68 : vector<8x32xf32>
    %70 = arith.addf %57, %61 : vector<8x32xf32>
    %71 = arith.negf %70 : vector<8x32xf32>
    %72 = math.exp %71 : vector<8x32xf32>
    %cst_25 = arith.constant 1.000000e+00 : f32
    %73 = vector.broadcast %cst_25 : f32 to vector<8x32xf32>
    %74 = arith.addf %73, %72 : vector<8x32xf32>
    %75 = arith.divf %73, %74 : vector<8x32xf32>
    %76 = arith.mulf %69, %63 : vector<8x32xf32>
    %77 = arith.addf %59, %76 : vector<8x32xf32>
    %78 = math.tanh %77 : vector<8x32xf32>
    %cst_26 = arith.constant 1.000000e+00 : f32
    %79 = vector.broadcast %cst_26 : f32 to vector<8x32xf32>
    %80 = arith.subf %79, %75 : vector<8x32xf32>
    %81 = arith.mulf %80, %78 : vector<8x32xf32>
    %82 = arith.mulf %75, %46 : vector<8x32xf32>
    %83 = arith.addf %81, %82 : vector<8x32xf32>
    %84 = arith.index_cast %c1_i32 : i32 to index
    %c0_27 = arith.constant 0 : index
    %c0_28 = arith.constant 0 : index
    %85 = vector.load %arg6[%84, %c0_27, %c0_28] : memref<4x8x32xf32, #tpu.memory_space<vmem>>, vector<1x8x32xf32>
    %86 = vector.shape_cast %85 : vector<1x8x32xf32> to vector<8x32xf32>
    %87 = vector.shape_cast %83 : vector<8x32xf32> to vector<1x8x32xf32>
    tpu.vector_store %arg6[%84, %c0_27, %c0_28], %87 {strides = array<i32>} : memref<4x8x32xf32, #tpu.memory_space<vmem>>, vector<1x8x32xf32>,
    %c2_i32 = arith.constant 2 : i32
    %88 = arith.index_cast %c2_i32 : i32 to index
    %c0_29 = arith.constant 0 : index
    %c0_30 = arith.constant 0 : index
    %c0_31 = arith.constant 0 : index
    %89 = vector.load %arg3[%88, %c0_29, %c0_30, %c0_31] : memref<4x3x8x32xf32, #tpu.memory_space<vmem>>, vector<1x3x8x32xf32>
    %90 = vector.shape_cast %89 : vector<1x3x8x32xf32> to vector<3x8x32xf32>
    %91 = vector.extract_strided_slice %90 {offsets = [0, 0, 0], sizes = [1, 8, 32], strides = [1, 1, 1]} : vector<3x8x32xf32> to vector<1x8x32xf32>
    %92 = vector.shape_cast %91 : vector<1x8x32xf32> to vector<8x32xf32>
    %93 = vector.extract_strided_slice %90 {offsets = [1, 0, 0], sizes = [1, 8, 32], strides = [1, 1, 1]} : vector<3x8x32xf32> to vector<1x8x32xf32>
    %94 = vector.shape_cast %93 : vector<1x8x32xf32> to vector<8x32xf32>
    %95 = vector.extract_strided_slice %90 {offsets = [2, 0, 0], sizes = [1, 8, 32], strides = [1, 1, 1]} : vector<3x8x32xf32> to vector<1x8x32xf32>
    %96 = vector.shape_cast %95 : vector<1x8x32xf32> to vector<8x32xf32>
    %cst_32 = arith.constant dense<0.000000e+00> : vector<8x32xf32>
    %97 = tpu.matmul %83, %5, %cst_32 {dimension_numbers = #tpu.dot_dimension_numbers<[1], [0], [0], [1], [0, 0, 1, 1], [], []>} : vector<8x32xf32>, vector<32x32xf32>, vector<8x32xf32> -> vector<8x32xf32>
    %cst_33 = arith.constant dense<0.000000e+00> : vector<8x32xf32>
    %98 = tpu.matmul %83, %7, %cst_33 {dimension_numbers = #tpu.dot_dimension_numbers<[1], [0], [0], [1], [0, 0, 1, 1], [], []>} : vector<8x32xf32>, vector<32x32xf32>, vector<8x32xf32> -> vector<8x32xf32>
    %cst_34 = arith.constant dense<0.000000e+00> : vector<8x32xf32>
    %99 = tpu.matmul %83, %9, %cst_34 {dimension_numbers = #tpu.dot_dimension_numbers<[1], [0], [0], [1], [0, 0, 1, 1], [], []>} : vector<8x32xf32>, vector<32x32xf32>, vector<8x32xf32> -> vector<8x32xf32>
    %100 = arith.addf %99, %12 : vector<8x32xf32>
    %101 = arith.addf %92, %97 : vector<8x32xf32>
    %102 = arith.negf %101 : vector<8x32xf32>
    %103 = math.exp %102 : vector<8x32xf32>
    %cst_35 = arith.constant 1.000000e+00 : f32
    %104 = vector.broadcast %cst_35 : f32 to vector<8x32xf32>
    %105 = arith.addf %104, %103 : vector<8x32xf32>
    %106 = arith.divf %104, %105 : vector<8x32xf32>
    %107 = arith.addf %94, %98 : vector<8x32xf32>
    %108 = arith.negf %107 : vector<8x32xf32>
    %109 = math.exp %108 : vector<8x32xf32>
    %cst_36 = arith.constant 1.000000e+00 : f32
    %110 = vector.broadcast %cst_36 : f32 to vector<8x32xf32>
    %111 = arith.addf %110, %109 : vector<8x32xf32>
    %112 = arith.divf %110, %111 : vector<8x32xf32>
    %113 = arith.mulf %106, %100 : vector<8x32xf32>
    %114 = arith.addf %96, %113 : vector<8x32xf32>
    %115 = math.tanh %114 : vector<8x32xf32>
    %cst_37 = arith.constant 1.000000e+00 : f32
    %116 = vector.broadcast %cst_37 : f32 to vector<8x32xf32>
    %117 = arith.subf %116, %112 : vector<8x32xf32>
    %118 = arith.mulf %117, %115 : vector<8x32xf32>
    %119 = arith.mulf %112, %83 : vector<8x32xf32>
    %120 = arith.addf %118, %119 : vector<8x32xf32>
    %121 = arith.index_cast %c2_i32 : i32 to index
    %c0_38 = arith.constant 0 : index
    %c0_39 = arith.constant 0 : index
    %122 = vector.load %arg6[%121, %c0_38, %c0_39] : memref<4x8x32xf32, #tpu.memory_space<vmem>>, vector<1x8x32xf32>
    %123 = vector.shape_cast %122 : vector<1x8x32xf32> to vector<8x32xf32>
    %124 = vector.shape_cast %120 : vector<8x32xf32> to vector<1x8x32xf32>
    tpu.vector_store %arg6[%121, %c0_38, %c0_39], %124 {strides = array<i32>} : memref<4x8x32xf32, #tpu.memory_space<vmem>>, vector<1x8x32xf32>,
    %c3_i32 = arith.constant 3 : i32
    %125 = arith.index_cast %c3_i32 : i32 to index
    %c0_40 = arith.constant 0 : index
    %c0_41 = arith.constant 0 : index
    %c0_42 = arith.constant 0 : index
    %126 = vector.load %arg3[%125, %c0_40, %c0_41, %c0_42] : memref<4x3x8x32xf32, #tpu.memory_space<vmem>>, vector<1x3x8x32xf32>
    %127 = vector.shape_cast %126 : vector<1x3x8x32xf32> to vector<3x8x32xf32>
    %128 = vector.extract_strided_slice %127 {offsets = [0, 0, 0], sizes = [1, 8, 32], strides = [1, 1, 1]} : vector<3x8x32xf32> to vector<1x8x32xf32>
    %129 = vector.shape_cast %128 : vector<1x8x32xf32> to vector<8x32xf32>
    %130 = vector.extract_strided_slice %127 {offsets = [1, 0, 0], sizes = [1, 8, 32], strides = [1, 1, 1]} : vector<3x8x32xf32> to vector<1x8x32xf32>
    %131 = vector.shape_cast %130 : vector<1x8x32xf32> to vector<8x32xf32>
    %132 = vector.extract_strided_slice %127 {offsets = [2, 0, 0], sizes = [1, 8, 32], strides = [1, 1, 1]} : vector<3x8x32xf32> to vector<1x8x32xf32>
    %133 = vector.shape_cast %132 : vector<1x8x32xf32> to vector<8x32xf32>
    %cst_43 = arith.constant dense<0.000000e+00> : vector<8x32xf32>
    %134 = tpu.matmul %120, %5, %cst_43 {dimension_numbers = #tpu.dot_dimension_numbers<[1], [0], [0], [1], [0, 0, 1, 1], [], []>} : vector<8x32xf32>, vector<32x32xf32>, vector<8x32xf32> -> vector<8x32xf32>
    %cst_44 = arith.constant dense<0.000000e+00> : vector<8x32xf32>
    %135 = tpu.matmul %120, %7, %cst_44 {dimension_numbers = #tpu.dot_dimension_numbers<[1], [0], [0], [1], [0, 0, 1, 1], [], []>} : vector<8x32xf32>, vector<32x32xf32>, vector<8x32xf32> -> vector<8x32xf32>
    %cst_45 = arith.constant dense<0.000000e+00> : vector<8x32xf32>
    %136 = tpu.matmul %120, %9, %cst_45 {dimension_numbers = #tpu.dot_dimension_numbers<[1], [0], [0], [1], [0, 0, 1, 1], [], []>} : vector<8x32xf32>, vector<32x32xf32>, vector<8x32xf32> -> vector<8x32xf32>
    %137 = arith.addf %136, %12 : vector<8x32xf32>
    %138 = arith.addf %129, %134 : vector<8x32xf32>
    %139 = arith.negf %138 : vector<8x32xf32>
    %140 = math.exp %139 : vector<8x32xf32>
    %cst_46 = arith.constant 1.000000e+00 : f32
    %141 = vector.broadcast %cst_46 : f32 to vector<8x32xf32>
    %142 = arith.addf %141, %140 : vector<8x32xf32>
    %143 = arith.divf %141, %142 : vector<8x32xf32>
    %144 = arith.addf %131, %135 : vector<8x32xf32>
    %145 = arith.negf %144 : vector<8x32xf32>
    %146 = math.exp %145 : vector<8x32xf32>
    %cst_47 = arith.constant 1.000000e+00 : f32
    %147 = vector.broadcast %cst_47 : f32 to vector<8x32xf32>
    %148 = arith.addf %147, %146 : vector<8x32xf32>
    %149 = arith.divf %147, %148 : vector<8x32xf32>
    %150 = arith.mulf %143, %137 : vector<8x32xf32>
    %151 = arith.addf %133, %150 : vector<8x32xf32>
    %152 = math.tanh %151 : vector<8x32xf32>
    %cst_48 = arith.constant 1.000000e+00 : f32
    %153 = vector.broadcast %cst_48 : f32 to vector<8x32xf32>
    %154 = arith.subf %153, %149 : vector<8x32xf32>
    %155 = arith.mulf %154, %152 : vector<8x32xf32>
    %156 = arith.mulf %149, %120 : vector<8x32xf32>
    %157 = arith.addf %155, %156 : vector<8x32xf32>
    %158 = arith.index_cast %c3_i32 : i32 to index
    %c0_49 = arith.constant 0 : index
    %c0_50 = arith.constant 0 : index
    %159 = vector.load %arg6[%158, %c0_49, %c0_50] : memref<4x8x32xf32, #tpu.memory_space<vmem>>, vector<1x8x32xf32>
    %160 = vector.shape_cast %159 : vector<1x8x32xf32> to vector<8x32xf32>
    %161 = vector.shape_cast %157 : vector<8x32xf32> to vector<1x8x32xf32>
    tpu.vector_store %arg6[%158, %c0_49, %c0_50], %161 {strides = array<i32>} : memref<4x8x32xf32, #tpu.memory_space<vmem>>, vector<1x8x32xf32>,
    %c4_i32 = arith.constant 4 : i32
    %c0_51 = arith.constant 0 : index
    %c0_52 = arith.constant 0 : index
    %162 = vector.load %arg7[%c0_51, %c0_52] : memref<8x32xf32, #tpu.memory_space<vmem>>, vector<8x32xf32>
    tpu.vector_store %arg7[%c0_51, %c0_52], %157 {strides = array<i32>} : memref<8x32xf32, #tpu.memory_space<vmem>>, vector<8x32xf32>,
    return
  }
  func.func @transform_0(%arg0: i32, %arg1: i32) -> (i32, i32) {
    %c0_i32 = arith.constant 0 : i32
    %c0_i32_0 = arith.constant 0 : i32
    return %arg0, %c0_i32 : i32, i32
  }
  func.func @transform_1(%arg0: i32, %arg1: i32) -> (i32, i32, i32, i32) {
    %c0_i32 = arith.constant 0 : i32
    %c0_i32_0 = arith.constant 0 : i32
    %c0_i32_1 = arith.constant 0 : i32
    return %arg1, %c0_i32, %arg0, %c0_i32_0 : i32, i32, i32, i32
  }
  func.func @transform_2(%arg0: i32, %arg1: i32) -> (i32, i32, i32) {
    %c0_i32 = arith.constant 0 : i32
    %c0_i32_0 = arith.constant 0 : i32
    %c0_i32_1 = arith.constant 0 : i32
    %c0_i32_2 = arith.constant 0 : i32
    return %c0_i32, %c0_i32_0, %c0_i32_1 : i32, i32, i32
  }
  func.func @transform_3(%arg0: i32, %arg1: i32) -> (i32, i32) {
    %c0_i32 = arith.constant 0 : i32
    %c0_i32_0 = arith.constant 0 : i32
    %c0_i32_1 = arith.constant 0 : i32
    return %c0_i32, %c0_i32_0 : i32, i32
  }
  func.func @transform_4(%arg0: i32, %arg1: i32) -> (i32, i32, i32) {
    %c0_i32 = arith.constant 0 : i32
    %c0_i32_0 = arith.constant 0 : i32
    return %arg1, %arg0, %c0_i32 : i32, i32, i32
  }
}

</mosaic_0001>

<bundles_post_ra>
// kernel: tpu_custom_call.1
= control target key start
LH: loop header
LB: loop body
LE: loop exit
PB: predicated region body
PF: predicated region fallthrough
CT: control target
= control target key end

     0   :  { %9 = vsyncpa [#allocation4], 0  ;;  %s2442_s0 = inlined_call_operand.hbm [shape: f32[8,32], index: 0, kind: input, shape index: {}]   ;;  %s2443_s1 = inlined_call_operand.hbm [shape: f32[8,3,8,32], index: 1, kind: input, shape index: {}]   ;;  %s2444_s2 = inlined_call_operand.hbm [shape: f32[3,32,32], index: 2, kind: input, shape index: {}]   ;;  %s2445_s3 = inlined_call_operand.vmem [shape: f32[1,32], index: 3, kind: input, shape index: {}]   ;;  %s2446_s4 = inlined_call_operand.hbm [shape: f32[8,8,32], index: 4, kind: output, shape index: {}]  }
   0x1   :  { %10 = vsyncpa [#allocation7], 0 }
   0x2   :  { %12 = vsyncpa [#allocation7 + $0x1], 0 }
   0x3   :  { %13 = vsyncpa [#allocation5], 0 }
   0x4   :  { %15 = vsyncpa [#allocation5 + $0x1], 0  ;;  %s2044_s15 = smov 0   ;;  %s2046_s16 = smov 0  }
   0x5   :  { %s2048_s17 = smov 0   ;;  %s2050_s18 = smov 0  }
   0x6   :  { %s2052_s19 = smov 0   ;;  %s2054_s20 = smov 0  }
   0x7 LB: > { %s2075_s21 = sadd.s32 4294967295, %s2006_s20   ;;  %s1381_s22 = sadd.s32 4294967294, %s2006_s20   ;;  %s2006_s20 = sphi %s2054_s20, %s21_s20   ;;  %s2002_s19 = sphi %s2052_s19, %s2477_s19   ;;  %s1998_s18 = sphi %s2050_s18, %s2476_s18   ;;  %s1994_s17 = sphi %s2048_s17, %s2475_s17   ;;  %s1990_s16 = sphi %s2046_s16, %s2474_s16   ;;  %s1986_s15 = sphi %s2044_s15, %s2473_s15  }
   0x8   : > { %p75_p0 = scmp.ne.s32.totalorder %s1994_s17, %s1990_s16  ;;  %p76_p1 = scmp.eq.s32.totalorder %s2006_s20, 0 }
   0x9   : > { %p81_p2 = scmp.ne.s32.totalorder %s1990_s16, %s1986_s15  ;;  %p2447_p3 = scmp.eq.s32.totalorder %s2075_s21, 0 }
   0xa   : > { %p149_p4 = scmp.eq.s32.totalorder %s2075_s21, 1  ;;  %p2085_p5 = por %p76_p1, %p75_p0 }
   0xb   : > { %p155_p6 = scmp.eq.s32.totalorder %s1381_s22, 1  ;;  %p2091_p7 = por %p2447_p3, %p81_p2 }
   0xc   : > { %p2095_p8 = por %p149_p4, %p75_p0  ;;  %p1382_p10 = scmp.ge.s32.totalorder %s2006_s20, 1 }
   0xd   : > { %s2454_s24 = scalar_select %p2091_p7, 1, 0 }
   0xe   : > { %s2455_s25 = scalar_select %p2095_p8, 1, 0 }
   0xf   : > { %p2099_p9 = por %p155_p6, %p81_p2  ;;  %p162_p11 = scmp.lt.s32.totalorder %s2006_s20, 3 }
  0x10   : > { %s2008_s28 = smov [#allocation8]   ;;  %p1729_p1 = scmp.lt.s32.totalorder %s2006_s20, 2 }
  0x11   : > { %s2456_s26 = scalar_select %p2099_p9, 1, 0 }
  0x12   : > { %p2105_p12 = pnand %p1382_p10, %p162_p11  ;;  %s187_s29 = sshll.u32 %s2008_s28, 4  ;;  %s2109_s29 = int_to_ptr.vmem [resolvable:$true] %s187_s29 }
  0x13   : > { %p2123_p4 = pnand %p1729_p1, %p2085_p5  ;;  %s2009_s6 = smov [#allocation3]  }
  0x14   : > { %s2457_s27 = scalar_select %p2105_p12, 1, 0 }
  0x15   : > { %p1712_p13 = pneg %p2105_p12  ;;  %s177_s7 = sshll.u32 %s2009_s6, 4  ;;  %s178_s7 = int_to_ptr.vmem [resolvable:$true] %s177_s7 }
  0x16   : > { %s2459_s5 = scalar_select %p2123_p4, 1, 0 }
  0x17   : > { %p2117_p2 = pnand %p1712_p13, %p2447_p3  ;;  %s1830_s10 = scalar_lea.hbm %s2444_s2, 1536 }
  0x18   : > { %p1831_p6 = scmp.ne.s32.totalorder %s2444_s2, %s1830_s10  ;;  %p1837_p5 = scmp.lt.u32.totalorder %s1830_s10, %s2444_s2 }
  0x19   : > { %p1832_p10 = pneg %p2117_p2 }
  0x1b   : > { %p1833_p11 = pnand %p1832_p10, %p1831_p6 }
  0x1d   : > { %p1834_p13 = pneg %p1833_p11 }
  0x1f   : > { %p1839_p1 = pnand %p1837_p5, %p1834_p13 }
  0x21   : > { %1842 = shalt.err (!%p1839_p1)
}
  0x22   : > { %s1843_s22 = scalar_lea.vmem %s2109_s29, 1536  ;;  %p1851_p8 = scmp.lt.s32.totalorder %s2109_s29, %s2109_s29 }
  0x23   : > { %p1844_p0 = scmp.ne.s32.totalorder %s2109_s29, %s1843_s22  ;;  %p1852_p6 = scmp.lt.s32.totalorder %s1843_s22, %s1843_s22 }
  0x25   : > { %p1846_p3 = pnand %p1844_p0, %p1832_p10  ;;  %p1853_p11 = por %p1852_p6, %p1851_p8 }
  0x27   : > { %p1847_p9 = pneg %p1846_p3 }
  0x29   : > { %p1854_p7 = pnand %p1853_p11, %p1847_p9 }
  0x2b   : > { %1857 = shalt.err (!%p1854_p7)
}
  0x2c   : > { %s2452_s23 = smov 128   ;;  %s2011_s28 = smov 8  }
  0x2d   : > { %1718 = dma.hbm_to_vmem [thread:$0]  (!%p2117_p2), %s2444_s2, 1536, %s2109_s29, [#allocation7], %s2452_s23, %s2452_s23, %s2011_s28  }
  0x2e   : > { %s1858_s11 = scalar_lea.hbm %s2442_s0, 128 }
  0x2f   : > { %p1859_p3 = scmp.ne.s32.totalorder %s2442_s0, %s1858_s11  ;;  %p1865_p9 = scmp.lt.u32.totalorder %s1858_s11, %s2442_s0 }
  0x31   : > { %p1861_p7 = pnand %p1859_p3, %p1832_p10 }
  0x33   : > { %p1862_p8 = pneg %p1861_p7 }
  0x35   : > { %p1867_p0 = pnand %p1865_p9, %p1862_p8 }
  0x37   : > { %1870 = shalt.err (!%p1867_p0)
}
  0x38   : > { %s1871_s29 = scalar_lea.vmem %s178_s7, 128  ;;  %p1879_p6 = scmp.lt.s32.totalorder %s178_s7, %s178_s7 }
  0x39   : > { %p1872_p13 = scmp.ne.s32.totalorder %s178_s7, %s1871_s29  ;;  %p1880_p11 = scmp.lt.s32.totalorder %s1871_s29, %s1871_s29 }
  0x3b   : > { %p1874_p5 = pnand %p1872_p13, %p1832_p10  ;;  %p1881_p12 = por %p1880_p11, %p1879_p6 }
  0x3d   : > { %p1875_p1 = pneg %p1874_p5 }
  0x3f   : > { %p1882_p4 = pnand %p1881_p12, %p1875_p1 }
  0x41   : > { %1885 = shalt.err (!%p1882_p4)
}
  0x42   : > { %1715 = dma.hbm_to_vmem [thread:$0]  (!%p2117_p2), %s2442_s0, 128, %s178_s7, [#allocation4]  }
  0x43   : > { %s204_s10 = sand.u32 1, %s2006_s20   ;;  %s30_s11 = sadd.s32 1, %s2002_s19 }
  0x44   : > { %s206_s12 = sand.u32 1, %s1994_s17   ;;  %p31_p12 = scmp.ge.s32.totalorder %s30_s11, 2 }
  0x45   : > { %s1697_s13 = smul.u32 96, %s206_s12  ;;  %s2197_s12 = scalar_lea.sflag [#allocation7], %s204_s10 }
  0x46   : > { %s1698_s14 = smul.u32 1536, %s2002_s19  ;;  %s2479_s11 = smov (%p31_p12, %s30_s11), 0 }
  0x47   : > { %s63_s7 = ssub.s32 %s2002_s19, %s2479_s11  ;;  %s208_s6 = scalar_lea.vmem [#allocation6], %s1697_s13 }
  0x48   : > { %s2187_s29 = scalar_lea.hbm %s2443_s1, %s1698_s14  ;;  %s217_s8 = sshll.u32 %s208_s6, 4  ;;  %s2195_s8 = int_to_ptr.vmem [resolvable:$true] %s217_s8 }
  0x49   : > { %p2191_p2 = scmp.eq.s32.totalorder %s63_s7, 0  ;;  %s1886_s23 = scalar_lea.hbm %s2187_s29, 1536 }
  0x4a   : > { %p1887_p4 = scmp.ne.s32.totalorder %s2187_s29, %s1886_s23  ;;  %p2461_p10 = scmp.ne.s32.totalorder %s2459_s5, 0 }
  0x4b   : > { %s1891_s13 = scalar_lea.hbm %s2443_s1, 3072  ;;  %p1892_p9 = scmp.lt.u32.totalorder %s2187_s29, %s2443_s1 }
  0x4c   : > { %p1888_p3 = pneg %p2461_p10  ;;  %p1893_p0 = scmp.lt.u32.totalorder %s1891_s13, %s1886_s23 }
  0x4d   : > { %p1895_p5 = scmp.lt.u32.totalorder %s1886_s23, %s2187_s29 }
  0x4e   : > { %p1889_p7 = pnand %p1888_p3, %p1887_p4  ;;  %p1894_p13 = por %p1893_p0, %p1892_p9 }
  0x50   : > { %p1890_p8 = pneg %p1889_p7  ;;  %p1896_p1 = por %p1895_p5, %p1894_p13 }
  0x52   : > { %p1897_p6 = pnand %p1896_p1, %p1890_p8 }
  0x54   : > { %1900 = shalt.err (!%p1897_p6)
}
  0x55   : > { %s1901_s10 = scalar_lea.vmem %s2195_s8, 1536  ;;  %s2012_s6 = smov [#allocation6]  }
  0x56   : > { %p1902_p11 = scmp.ne.s32.totalorder %s2195_s8, %s1901_s10  ;;  %s1906_s14 = sshll.u32 %s2012_s6, 4  ;;  %s1907_s14 = int_to_ptr.vmem [resolvable:$false] %s1906_s14 }
  0x57   : > { %s1908_s30 = scalar_lea.vmem %s1907_s14, 3072  ;;  %p1909_p7 = scmp.lt.s32.totalorder %s2195_s8, %s1907_s14 }
  0x58   : > { %p1904_p12 = pnand %p1902_p11, %p1888_p3  ;;  %p1910_p9 = scmp.lt.s32.totalorder %s1908_s30, %s1901_s10 }
  0x5a   : > { %p1905_p4 = pneg %p1904_p12  ;;  %p1911_p0 = por %p1910_p9, %p1909_p7 }
  0x5c   : > { %p1912_p13 = pnand %p1911_p0, %p1905_p4 }
  0x5e   : > { %1915 = shalt.err (!%p1912_p13)
}
  0x5f   : > { %s2462_s23 = smov 128   ;;  %s2463_s13 = sadd.s32 1, %s1994_s17 }
  0x60   : > { %1722 = dma.hbm_to_vmem [thread:$0]  (!%p2461_p10), %s2187_s29, 1536, %s2195_s8, %s2197_s12, %s2462_s23, %s2462_s23, %s2011_s28  }
  0x61   : > { %s2233_s22 = scalar_select %p2191_p2, %s1994_s17, %s2463_s13  }
  0x62   : > { %p2464_p3 = scmp.ne.s32.totalorder %s2457_s27, 0 }
  0x63   : > { %p2465_p8 = scmp.eq.s32.totalorder (!%p2464_p3), %s2075_s21, 0 }
  0x64   : > { %229 = sbr.rel (%p2464_p3) target bundleno = 1186 (0x4a2), region = 36 }
  0x6b   : > { %1969 = dma.done.wait (%p2465_p8), [#allocation4], 128   ;;  %p2466_p5 = pmov %p2465_p8 }
  0x6c   : > { %s235_s5 = sand.u32 1, %s2075_s21   ;;  %s2243_s7 = sand.u32 1, %s1990_s16  }
  0x6d   : > { %1971 = vsyncadd (%p2466_p5), [#allocation4], 4294967168  ;;  %s1699_s28 = smul.u32 96, %s2243_s7  ;;  %s236_s9 = scalar_lea.sflag [#allocation7], %s235_s5 }
  0x6e   : > { %p2467_p2 = scmp.ne.s32.totalorder %s2454_s24, 0 }
  0x6f   : > { %s2246_s29 = scalar_lea.vmem [#allocation6], %s1699_s28 }
  0x70   : > { %1973 = dma.done.wait (%p2467_p2), %s236_s9, 1536  }
  0x71   : > { %1975 = vsyncadd (%p2467_p2), %s236_s9, 4294965760  ;;  %p2468_p10 = pmov %p2466_p5 }
  0x72   : > { %p2469_p1 = pmov %p2466_p5 }
  0x73   : > { %1977 = dma.done.wait (%p2468_p10), [#allocation7], 1536  }
  0x74   : > { %1979 = vsyncadd (%p2469_p1), [#allocation7], 4294965760  ;;  %s1392_s27 = sshll.u32 %s2243_s7, 5  ;;  %p1393_p6 = scmp.ne.s32.totalorder %s1998_s18, 0 }
  0x75   : > { %s2257_s8 = scalar_lea.vmem [#allocation9], %s1392_s27  ;;  %v274_v0 = vld [vmem:[#allocation3] sm:$0xff] (!%p1393_p6)  ;;  %vm275_vm0 = vcmask (!%p1393_p6), 261120  }
  0x76   : > { %273 = sbr.rel (%p1393_p6) target bundleno = 125 (0x7d), region = 52  ;;  %276 = vst.msk [vmem:[#allocation2] sm:$0xff] (!%p1393_p6), %vm275_vm0, %v274_v0 }
  0x7d PF: > { %v277_v1 = vld [vmem:[#allocation8] sm:$0xff]  ;;  %v278_v2 = vld [vmem:[#allocation8 + $0x8] sm:$0xff]  ;;  %v279_v3 = vld [vmem:[#allocation8 + $0x10] sm:$0xff]  ;;  %v2013_v4 = vmov 0.0|0.0   ;;  %vm2014_vm1 = vmmov 0   ;;  %v2015_v7 = vmov 0.0  }
  0x7e   : > { %1625 = vmatprep.subr.bf16.mxu0 %v2013_v4  ;;  %v2261_v5 = vpack.c.bf16 %v278_v2, %v277_v1  ;;  %v280_v6 = vld [vmem:[#allocation8 + $0x18] sm:$0xff]  ;;  %1501 = vmatprep.mubr.msk.f32.mxu0 %vm2014_vm1, %v2015_v7  ;;  %v281_v8 = vld [vmem:[#allocation8 + $0x20] sm:$0xff]  ;;  %v282_v9 = vld [vmem:[#allocation8 + $0x28] sm:$0xff]  ;;  %vm300_vm2 = vcmask 261120   ;;  %s1432_s12 = sshll.u32 %s1998_s18, 9  ;;  %s1272_s10 = sshll.u32 %s2257_s8, 4  ;;  %s2390_s10 = int_to_ptr.vmem [resolvable:$true] %s1272_s10 }
  0x7f   : > { %1631 = vmatprep.subr.bf16.mxu1 %v2013_v4  ;;  %v283_v10 = vld [vmem:[#allocation8 + $0x30] sm:$0xff]  ;;  %v284_v11 = vld [vmem:[#allocation8 + $0x38] sm:$0xff]  ;;  %1512 = vmatprep.mubr.msk.f32.mxu1 %vm2014_vm1, %v2015_v7  ;;  %v2269_v12 = vpack.c.bf16 %v280_v6, %v279_v3  ;;  %v2271_v13 = vpack.c.bf16 %v282_v9, %v281_v8  ;;  %v285_v14 = vld [vmem:[#allocation8 + $0x40] sm:$0xff]  ;;  %s2388_s30 = scalar_lea.hbm %s2446_s4, %s1432_s12  ;;  %s1258_s18 = scalar_lea.sflag [#allocation5], %s2243_s7 }
  0x80   : > { %1627 = vmatpush3.bf16.msra.mxu0 %v2261_v5  ;;  %v286_v15 = vld [vmem:[#allocation8 + $0x48] sm:$0xff]  ;;  %v2275_v16 = vpack.c.bf16 %v284_v11, %v283_v10  ;;  %v296_v17 = vld [vmem:[#allocation2] sm:$0xff]  ;;  %v288_v20 = vld [vmem:[#allocation8 + $0x58] sm:$0xff]  ;;  %s1916_s23 = scalar_lea.vmem %s2390_s10, 512  ;;  %p2470_p12 = scmp.ne.s32.totalorder %s2455_s25, 0 }
  0x81   : > { %1628 = vmatprep.subr.bf16.mxu0 %v2013_v4  ;;  %1633 = vmatpush3.bf16.msra.mxu1 %v2271_v13  ;;  %v2279_v18 = vpack.c.bf16 %v286_v15, %v285_v14  ;;  %v287_v19 = vld [vmem:[#allocation8 + $0x50] sm:$0xff]  ;;  %v297_v22 = vld [vmem:[%s2246_s29] sm:$0xff]  ;;  %v298_v24 = vld [vmem:[%s2246_s29 + $0x8] sm:$0xff]  ;;  %p1917_p11 = scmp.ne.s32.totalorder %s2390_s10, %s1916_s23  ;;  %s2016_s13 = smov [#allocation9]  }
  0x82   : > { %1634 = vmatprep.subr.bf16.mxu1 %v2013_v4  ;;  %v2286_v21 = vpack.c.bf16 %v288_v20, %v287_v19  ;;  %v2312_v37 = vld [vmem:[%s2445_s3] ss:$0 sm:$0xff]  ;;  %v1400_v50 = vld [vmem:[%s2246_s29 + $0x18] sm:$0xff]  ;;  %v1401_v54 = vld [vmem:[%s2246_s29 + $0x20] sm:$0xff]  ;;  %s1920_s5 = sshll.u32 %s2016_s13, 4  ;;  %s1921_s5 = int_to_ptr.vmem [resolvable:$false] %s1920_s5 }
  0x83   : > { %v299_v41 = vld [vmem:[%s2246_s29 + $0x10] sm:$0xff]  ;;  %v1402_v6 = vld [vmem:[%s2246_s29 + $0x28] sm:$0xff]  ;;  %p1918_p4 = pnand %p1917_p11, %p2470_p12  ;;  %s1922_s28 = scalar_lea.vmem %s1921_s5, 1024 }
  0x84   : > { %1630 = vmatpush3.bf16.msra.mxu0 %v2269_v12  ;;  %p1923_p9 = scmp.lt.s32.totalorder %s2390_s10, %s1921_s5  ;;  %p1924_p0 = scmp.lt.s32.totalorder %s1922_s28, %s1916_s23 }
  0x85   : > { %1637 = vmatprep.subr.bf16.mxu0 %v2013_v4  ;;  %1636 = vmatpush3.bf16.msra.mxu1 %v2275_v16  ;;  %p1919_p7 = pneg %p1918_p4 }
  0x86   : > { %1643 = vmatprep.subr.bf16.mxu1 %v2013_v4  ;;  %p1925_p13 = por %p1924_p0, %p1923_p9 }
  0x87   : > { %1502 = vmatmul.mubr.msk.f32.vlgmr.msra.gmra.mrb[0].mxu0 %vm300_vm2, %v296_v17 }
  0x88   : > { %1639 = vmatpush3.bf16.msra.mxu0 %v2279_v18  ;;  %1523 = vmatprep.mubr.msk.f32.mxu0 %vm2014_vm1, %v2015_v7  ;;  %p1926_p3 = pnand %p1925_p13, %p1919_p7 }
  0x89   : > { %1513 = vmatmul.mubr.msk.f32.vlgmr.msra.gmra.mrb[0].mxu1 %vm300_vm2, %v296_v17  ;;  %1640 = vmatprep.subr.bf16.mxu0 %v2013_v4 }
  0x8a   : > { %1645 = vmatpush3.bf16.msra.mxu1 %v2261_v5  ;;  %1534 = vmatprep.mubr.msk.f32.mxu1 %vm2014_vm1, %v2015_v7 }
  0x8b   : > { %1646 = vmatprep.subr.bf16.mxu1 %v2013_v4 }
  0x8c   : > { %1642 = vmatpush3.bf16.msra.mxu0 %v2286_v21 }
  0x8d   : > { %1649 = vmatprep.subr.bf16.mxu0 %v2013_v4 }
  0x8e   : > { %1648 = vmatpush3.bf16.msra.mxu1 %v2269_v12 }
  0x8f   : > { %1524 = vmatmul.mubr.msk.f32.vlgmr.msra.gmra.mrb[2].mxu0 %vm300_vm2, %v296_v17  ;;  %1655 = vmatprep.subr.bf16.mxu1 %v2013_v4 }
  0x90   : > { %1651 = vmatpush3.bf16.msra.mxu0 %v2271_v13  ;;  %1545 = vmatprep.mubr.msk.f32.mxu0 %vm2014_vm1, %v2015_v7 }
  0x91   : > { %1652 = vmatprep.subr.bf16.mxu0 %v2013_v4 }
  0x94   : > { %1654 = vmatpush3.bf16.msra.mxu0 %v2275_v16 }
  0x95   : > { %1661 = vmatprep.subr.bf16.mxu0 %v2013_v4 }
 0x15a   : > { %v370_v23 = vpop.f32.mrb[0].mxu0 }
 0x15b   : > { %v514_v25 = vadd.f32 %v370_v23, %v297_v22  ;;  %v1503_v26 = vpop.f32.mrb[1].mxu0 }
 0x15c   : > { %v440_v27 = vpop.f32.mrb[0].mxu1 }
 0x15d   : > { %v1398_v28 = vmul.f32 -1.442695, %v514_v25  ;;  %v521_v29 = vadd.f32 %v440_v27, %v298_v24  ;;  %v1514_v30 = vpop.f32.mrb[1].mxu1  ;;  %v1410_v24 = vld [vmem:[%s2246_s29 + $0x38] sm:$0xff] }
 0x15f   : > { %1790 = vpow2.f32 %v1398_v28  ;;  %v1399_v31 = vmul.f32 -1.442695, %v521_v29 }
 0x161   : > { %1792 = vpow2.f32 %v1399_v31 }
 0x162   : > { %v510_v32 = vpop.f32.mrb[2].mxu0 }
 0x163   : > { %v1525_v33 = vpop.f32.mrb[3].mxu0  ;;  %v511_v39 = vadd.f32 %v2312_v37, %v510_v32 }
 0x169   : > { %v1791_v34 = vpop.eup %1790 }
 0x16a   : > { %v518_v35 = vadd.f32 1.0, %v1791_v34 }
 0x16b   : > { %v1793_v36 = vpop.eup %1792 }
 0x16c   : > { %1794 = vrcp.f32 %v518_v35  ;;  %v525_v38 = vadd.f32 1.0, %v1793_v36  ;;  %v1411_v35 = vld [vmem:[%s2246_s29 + $0x40] sm:$0xff] }
 0x16e   : > { %1796 = vrcp.f32 %v525_v38 }
 0x176   : > { %v1795_v40 = vpop.eup %1794 }
 0x177   : > { %v528_v42 = vmul.f32 %v1795_v40, %v511_v39 }
 0x178   : > { %v1797_v44 = vpop.eup %1796 }
 0x179   : > { %v529_v43 = vadd.f32 %v528_v42, %v299_v41  ;;  %v531_v45 = vsub.f32 1.0, %v1797_v44  ;;  %v533_v48 = vmul.f32 %v1797_v44, %v296_v17 }
 0x17b   : > { %1798 = vtanh.f32 %v529_v43 }
 0x185   : > { %v1799_v46 = vpop.eup %1798 }
 0x186   : > { %v532_v47 = vmul.f32 %v1799_v46, %v531_v45  ;;  %v1418_v45 = vld [vmem:[%s2246_s29 + $0x48] sm:$0xff] }
 0x188   : > { %v534_v49 = vadd.f32 %v533_v48, %v532_v47 }
 0x18a   : > { %1535 = vmatmul.mubr.msk.f32.vlgmr.msra.gmra.mrb[2].mxu1 %vm300_vm2, %v534_v49  ;;  %535 = vst.msk [vmem:[%s2257_s8] sm:$0xff] %vm300_vm2, %v534_v49  ;;  %1546 = vmatmul.mubr.msk.f32.vlgmr.msra.gmra.mrb[4].mxu0 %vm300_vm2, %v534_v49 }
 0x18b   : > { %1657 = vmatpush3.bf16.msra.mxu1 %v2279_v18  ;;  %1556 = vmatprep.mubr.msk.f32.mxu1 %vm2014_vm1, %v2015_v7 }
 0x18c   : > { %1658 = vmatprep.subr.bf16.mxu1 %v2013_v4  ;;  %1663 = vmatpush3.bf16.msra.mxu0 %v2261_v5 }
 0x18d   : > { %1664 = vmatprep.subr.bf16.mxu0 %v2013_v4  ;;  %1567 = vmatprep.mubr.msk.f32.mxu0 %vm2014_vm1, %v2015_v7 }
 0x18f   : > { %1660 = vmatpush3.bf16.msra.mxu1 %v2286_v21 }
 0x190   : > { %1667 = vmatprep.subr.bf16.mxu1 %v2013_v4  ;;  %1666 = vmatpush3.bf16.msra.mxu0 %v2269_v12 }
 0x191   : > { %1673 = vmatprep.subr.bf16.mxu0 %v2013_v4 }
 0x192   : > { %1557 = vmatmul.mubr.msk.f32.vlgmr.msra.gmra.mrb[4].mxu1 %vm300_vm2, %v534_v49 }
 0x193   : > { %1669 = vmatpush3.bf16.msra.mxu1 %v2271_v13  ;;  %1578 = vmatprep.mubr.msk.f32.mxu1 %vm2014_vm1, %v2015_v7 }
 0x194   : > { %1670 = vmatprep.subr.bf16.mxu1 %v2013_v4 }
 0x197   : > { %1672 = vmatpush3.bf16.msra.mxu1 %v2275_v16 }
 0x198   : > { %1679 = vmatprep.subr.bf16.mxu1 %v2013_v4 }
 0x25d   : > { %v609_v51 = vpop.f32.mrb[2].mxu1  ;;  %v679_v52 = vpop.f32.mrb[4].mxu0 }
 0x25e   : > { %v753_v53 = vadd.f32 %v1400_v50, %v609_v51  ;;  %v1536_v55 = vpop.f32.mrb[3].mxu1  ;;  %v1547_v56 = vpop.f32.mrb[5].mxu0  ;;  %v760_v58 = vadd.f32 %v1401_v54, %v679_v52 }
 0x260   : > { %v1406_v57 = vmul.f32 -1.442695, %v753_v53  ;;  %v1407_v59 = vmul.f32 -1.442695, %v760_v58 }
 0x262   : > { %1800 = vpow2.f32 %v1406_v57 }
 0x263   : > { %1802 = vpow2.f32 %v1407_v59  ;;  %v1420_v59 = vld [vmem:[%s2246_s29 + $0x58] sm:$0xff] }
 0x265   : > { %v749_v60 = vpop.f32.mrb[4].mxu1 }
 0x266   : > { %v1558_v61 = vpop.f32.mrb[5].mxu1  ;;  %v750_v2 = vadd.f32 %v2312_v37, %v749_v60 }
 0x26c   : > { %v1801_v62 = vpop.eup %1800 }
 0x26d   : > { %v757_v63 = vadd.f32 1.0, %v1801_v62  ;;  %v1803_v0 = vpop.eup %1802 }
 0x26e   : > { %v764_v1 = vadd.f32 1.0, %v1803_v0 }
 0x26f   : > { %1804 = vrcp.f32 %v757_v63 }
 0x270   : > { %1806 = vrcp.f32 %v764_v1 }
 0x279   : > { %v1805_v3 = vpop.eup %1804 }
 0x27a   : > { %v767_v8 = vmul.f32 %v1805_v3, %v750_v2  ;;  %v1807_v10 = vpop.eup %1806 }
 0x27b   : > { %v770_v11 = vsub.f32 1.0, %v1807_v10  ;;  %v772_v17 = vmul.f32 %v1807_v10, %v534_v49  ;;  %v1419_v49 = vld [vmem:[%s2246_s29 + $0x50] sm:$0xff] }
 0x27c   : > { %v768_v9 = vadd.f32 %v1402_v6, %v767_v8 }
 0x27e   : > { %1808 = vtanh.f32 %v768_v9 }
 0x288   : > { %v1809_v14 = vpop.eup %1808 }
 0x289   : > { %v771_v15 = vmul.f32 %v1809_v14, %v770_v11 }
 0x28b   : > { %v773_v19 = vadd.f32 %v772_v17, %v771_v15 }
 0x28d   : > { %1568 = vmatmul.mubr.msk.f32.vlgmr.msra.gmra.mrb[6].mxu0 %vm300_vm2, %v773_v19  ;;  %1408 = vst.msk [vmem:[%s2257_s8 + $0x8] sm:$0xff] %vm300_vm2, %v773_v19  ;;  %1579 = vmatmul.mubr.msk.f32.vlgmr.msra.gmra.mrb[6].mxu1 %vm300_vm2, %v773_v19 }
 0x28e   : > { %1675 = vmatpush3.bf16.msra.mxu0 %v2279_v18  ;;  %1589 = vmatprep.mubr.msk.f32.mxu0 %vm2014_vm1, %v2015_v7 }
 0x28f   : > { %1676 = vmatprep.subr.bf16.mxu0 %v2013_v4  ;;  %1681 = vmatpush3.bf16.msra.mxu1 %v2261_v5  ;;  %v1409_v5 = vld [vmem:[%s2246_s29 + $0x30] sm:$0xff] }
 0x290   : > { %1682 = vmatprep.subr.bf16.mxu1 %v2013_v4  ;;  %1600 = vmatprep.mubr.msk.f32.mxu1 %vm2014_vm1, %v2015_v7 }
 0x292   : > { %1678 = vmatpush3.bf16.msra.mxu0 %v2286_v21 }
 0x293   : > { %1685 = vmatprep.subr.bf16.mxu0 %v2013_v4  ;;  %1684 = vmatpush3.bf16.msra.mxu1 %v2269_v12 }
 0x294   : > { %1691 = vmatprep.subr.bf16.mxu1 %v2013_v4 }
 0x295   : > { %1590 = vmatmul.mubr.msk.f32.vlgmr.msra.gmra.mrb[8].mxu0 %vm300_vm2, %v773_v19 }
 0x296   : > { %1687 = vmatpush3.bf16.msra.mxu0 %v2271_v13  ;;  %1611 = vmatprep.mubr.msk.f32.mxu0 %vm2014_vm1, %v2015_v7 }
 0x297   : > { %1688 = vmatprep.subr.bf16.mxu0 %v2013_v4 }
 0x29a   : > { %1690 = vmatpush3.bf16.msra.mxu0 %v2275_v16 }
 0x360   : > { %v849_v20 = vpop.f32.mrb[6].mxu0  ;;  %v919_v22 = vpop.f32.mrb[6].mxu1 }
 0x361   : > { %v993_v23 = vadd.f32 %v1409_v5, %v849_v20  ;;  %v1569_v25 = vpop.f32.mrb[7].mxu0  ;;  %v1580_v12 = vpop.f32.mrb[7].mxu1  ;;  %v1000_v27 = vadd.f32 %v1410_v24, %v919_v22 }
 0x363   : > { %v1415_v26 = vmul.f32 -1.442695, %v993_v23  ;;  %v1416_v28 = vmul.f32 -1.442695, %v1000_v27 }
 0x365   : > { %1810 = vpow2.f32 %v1415_v26 }
 0x366   : > { %1812 = vpow2.f32 %v1416_v28 }
 0x368   : > { %v989_v13 = vpop.f32.mrb[8].mxu0 }
 0x369   : > { %v1591_v29 = vpop.f32.mrb[9].mxu0  ;;  %v990_v33 = vadd.f32 %v2312_v37, %v989_v13 }
 0x36f   : > { %v1811_v30 = vpop.eup %1810 }
 0x370   : > { %v997_v31 = vadd.f32 1.0, %v1811_v30  ;;  %v1813_v32 = vpop.eup %1812 }
 0x371   : > { %v1004_v16 = vadd.f32 1.0, %v1813_v32 }
 0x372   : > { %1814 = vrcp.f32 %v997_v31 }
 0x373   : > { %1816 = vrcp.f32 %v1004_v16 }
 0x37c   : > { %v1815_v34 = vpop.eup %1814 }
 0x37d   : > { %v1007_v36 = vmul.f32 %v1815_v34, %v990_v33  ;;  %v1817_v39 = vpop.eup %1816 }
 0x37e   : > { %v1010_v40 = vsub.f32 1.0, %v1817_v39  ;;  %v1012_v43 = vmul.f32 %v1817_v39, %v773_v19 }
 0x37f   : > { %v1008_v38 = vadd.f32 %v1411_v35, %v1007_v36 }
 0x381   : > { %1818 = vtanh.f32 %v1008_v38 }
 0x38b   : > { %v1819_v41 = vpop.eup %1818 }
 0x38c   : > { %v1011_v42 = vmul.f32 %v1819_v41, %v1010_v40 }
 0x38e   : > { %v1013_v44 = vadd.f32 %v1012_v43, %v1011_v42 }
 0x390   : > { %1601 = vmatmul.mubr.msk.f32.vlgmr.msra.gmra.mrb[8].mxu1 %vm300_vm2, %v1013_v44  ;;  %1417 = vst.msk [vmem:[%s2257_s8 + $0x10] sm:$0xff] %vm300_vm2, %v1013_v44  ;;  %1612 = vmatmul.mubr.msk.f32.vlgmr.msra.gmra.mrb[10].mxu0 %vm300_vm2, %v1013_v44 }
 0x391   : > { %1693 = vmatpush3.bf16.msra.mxu1 %v2279_v18  ;;  %1622 = vmatprep.mubr.msk.f32.mxu1 %vm2014_vm1, %v2015_v7 }
 0x392   : > { %1694 = vmatprep.subr.bf16.mxu1 %v2013_v4 }
 0x395   : > { %1696 = vmatpush3.bf16.msra.mxu1 %v2286_v21 }
 0x398   : > { %1623 = vmatmul.mubr.msk.f32.vlgmr.msra.gmra.mrb[10].mxu1 %vm300_vm2, %v1013_v44 }
 0x463   : > { %v1089_v46 = vpop.f32.mrb[8].mxu1  ;;  %v1159_v47 = vpop.f32.mrb[10].mxu0 }
 0x464   : > { %v1233_v48 = vadd.f32 %v1418_v45, %v1089_v46  ;;  %v1602_v50 = vpop.f32.mrb[9].mxu1  ;;  %v1613_v51 = vpop.f32.mrb[11].mxu0  ;;  %v1240_v53 = vadd.f32 %v1419_v49, %v1159_v47 }
 0x466   : > { %v1424_v52 = vmul.f32 -1.442695, %v1233_v48  ;;  %v1425_v18 = vmul.f32 -1.442695, %v1240_v53 }
 0x468   : > { %1820 = vpow2.f32 %v1424_v52 }
 0x469   : > { %1822 = vpow2.f32 %v1425_v18 }
 0x46b   : > { %v1229_v54 = vpop.f32.mrb[10].mxu1 }
 0x46c   : > { %v1624_v7 = vpop.f32.mrb[11].mxu1  ;;  %v1230_v57 = vadd.f32 %v2312_v37, %v1229_v54 }
 0x472   : > { %v1821_v4 = vpop.eup %1820 }
 0x473   : > { %v1237_v21 = vadd.f32 1.0, %v1821_v4  ;;  %v1823_v55 = vpop.eup %1822 }
 0x474   : > { %v1244_v56 = vadd.f32 1.0, %v1823_v55 }
 0x475   : > { %1824 = vrcp.f32 %v1237_v21 }
 0x476   : > { %1826 = vrcp.f32 %v1244_v56 }
 0x47f   : > { %v1825_v58 = vpop.eup %1824 }
 0x480   : > { %v1247_v60 = vmul.f32 %v1825_v58, %v1230_v57  ;;  %v1827_v62 = vpop.eup %1826 }
 0x481   : > { %v1250_v63 = vsub.f32 1.0, %v1827_v62  ;;  %v1252_v1 = vmul.f32 %v1827_v62, %v1013_v44 }
 0x482   : > { %v1248_v61 = vadd.f32 %v1420_v59, %v1247_v60 }
 0x484   : > { %1828 = vtanh.f32 %v1248_v61 }
 0x48e   : > { %v1829_v0 = vpop.eup %1828 }
 0x48f   : > { %v1251_v2 = vmul.f32 %v1829_v0, %v1250_v63 }
 0x491   : > { %v1253_v37 = vadd.f32 %v1252_v1, %v1251_v2 }
 0x493   : > { %1256 = vst.msk [vmem:[#allocation2] sm:$0xff] %vm300_vm2, %v1253_v37  ;;  %1426 = vst.msk [vmem:[%s2257_s8 + $0x18] sm:$0xff] %vm300_vm2, %v1253_v37 }
 0x494   : > { %1929 = shalt.err (!%p1926_p3)
}
 0x495   : > { %s1930_s9 = scalar_lea.hbm %s2388_s30, 512  ;;  %s1934_s8 = scalar_lea.hbm %s2446_s4, 1024 }
 0x496   : > { %p1931_p8 = scmp.ne.s32.totalorder %s2388_s30, %s1930_s9  ;;  %p1935_p10 = scmp.lt.u32.totalorder %s2388_s30, %s2446_s4 }
 0x497   : > { %p1936_p1 = scmp.lt.u32.totalorder %s1934_s8, %s1930_s9  ;;  %p1938_p11 = scmp.lt.u32.totalorder %s1930_s9, %s2388_s30 }
 0x498   : > { %p1932_p5 = pnand %p1931_p8, %p2470_p12 }
 0x499   : > { %p1937_p6 = por %p1936_p1, %p1935_p10 }
 0x49a   : > { %p1933_p2 = pneg %p1932_p5 }
 0x49b   : > { %p1939_p4 = por %p1938_p11, %p1937_p6 }
 0x49d   : > { %p1940_p7 = pnand %p1939_p4, %p1933_p2 }
 0x49f   : > { %1943 = shalt.err (!%p1940_p7)
}
 0x4a0   : > { %s2017_s12 = smov 128   ;;  %s2018_s6 = smov 8  }
 0x4a1   : > { %1710 = dma.vmem_to_hbm [thread:$0]  (%p2470_p12), %s2390_s10, 512, %s2388_s30, %s1258_s18, %s2017_s12, %s2017_s12, %s2018_s6  }
 0x4a2 PF: > { %s1287_s14 = sand.u32 1, %s1986_s15   ;;  %p2471_p9 = scmp.ne.s32.totalorder %s2456_s26, 0 }
 0x4a3   : > { %p2472_p0 = scmp.ge.s32.totalorder %s2006_s20, 2  ;;  %s1288_s23 = scalar_lea.sflag [#allocation5], %s1287_s14 }
 0x4a5   : > { %p1724_p13 = pnand %p2472_p0, %p2471_p9 }
 0x4a7   : > { %1981 = dma.done.wait (!%p1724_p13), %s1288_s23, 512  }
 0x4a8   : > { %1983 = vsyncadd (!%p1724_p13), %s1288_s23, 4294966784  ;;  %s21_s20 = sadd.s32 1, %s2006_s20   ;;  %s2473_s15 = smov %s1990_s16 }
 0x4a9   : > { %p18_p3 = scmp.ge.s32.totalorder %s21_s20, 4   ;;  %s2474_s16 = smov %s1994_s17 }
 0x4aa   : > { %s2475_s17 = smov %s2233_s22  ;;  %s2476_s18 = smov %s2002_s19 }
 0x4ab   : > { %s2477_s19 = smov %s2479_s11  ;;  %20 = sbr.rel (!%p18_p3) target bundleno = 7 (0x7), region = 101 }
 0x4b2   :  { %1293 = vsyncpa [#allocation4], 1 }
 0x4b3   :  { %1295 = vsyncpa [#allocation4 + $0x1], 1 }
 0x4b4   :  { %1296 = vsyncpa [#allocation7], 1 }
 0x4b5   :  { %1298 = vsyncpa [#allocation7 + $0x1], 1 }
 0x4b6   :  { %1299 = vsyncpa [#allocation5], 1 }
 0x4b7   :  { %1301 = vsyncpa [#allocation5 + $0x1], 1 }

</bundles_post_ra>
